<compile_context>
chip_gen: v7x
topology: tpu7x:2x2x1
jax: 0.10.0
libtpu: 0.0.40
codegen_flags: <defaults>
</compile_context>

<pallas_src>
import functools

import jax
import jax.numpy as jnp
from jax import lax
from jax.experimental import pallas as pl
from jax.experimental.pallas import tpu as pltpu

LANES = 128
SUBLANES = 8
DEFAULT_BLOCK_BYTES = 4 * 1024 * 1024   # per input, per pipeline buffer
MAX_BLOCK_ROWS = 8192                   # caps f32 intermediates at 4 MiB each
VMEM_LIMIT_BYTES = 48 * 1024 * 1024     # raises v5e's 16 MiB default; <= v7x 64 MiB


def _round_down(n, m):
    return (n // m) * m


def _sublane_multiple(*dtypes):
    # Sub-32-bit dtypes pack along sublanes; keep block rows tile-aligned for
    # the narrowest input dtype.
    min_itemsize = min(jnp.dtype(d).itemsize for d in dtypes)
    return SUBLANES * max(1, 4 // min_itemsize)


def _mse_partial_kernel(x_ref, t_ref, o_ref, *, block_rows, steps_per_core,
                        num_blocks, num_cores, valid_rows):
    c = pl.program_id(0)                 # core-split axis ("parallel")
    i = pl.program_id(1)                 # reduction axis ("arbitrary")
    block_idx = c * steps_per_core + i   # global block index

    @pl.when(i == 0)
    def _init():
        o_ref[...] = jnp.zeros_like(o_ref)

    def accumulate(mask_rows):
        d = x_ref[...].astype(jnp.float32) - t_ref[...].astype(jnp.float32)
        if mask_rows:
            # Select (not multiply) before squaring so garbage/NaN in the
            # over-read rows of the partial last block cannot leak.
            row0 = block_idx * block_rows
            row_ids = row0 + lax.broadcasted_iota(
                jnp.int32, (block_rows, LANES), 0)
            d = jnp.where(row_ids < valid_rows, d, 0.0)
        sq = d * d
        # Fold the (block_rows, 128) block into the resident (8, 128)
        # accumulator with pure VPU adds (no per-step XLU/scalar reduction).
        o_ref[...] += jnp.sum(
            sq.reshape(block_rows // SUBLANES, SUBLANES, LANES), axis=0)

    needs_mask = (valid_rows % block_rows) != 0          # static
    has_overhang = num_cores * steps_per_core > num_blocks  # static
    last_block = num_blocks - 1

    if not needs_mask and not has_overhang:
        accumulate(False)
    elif not needs_mask:
        # Odd block count on the 2-core split: skip the duplicated step.
        @pl.when(block_idx < num_blocks)
        def _():
            accumulate(False)
    else:
        # Full blocks: unmasked fast path.
        @pl.when(block_idx < last_block)
        def _():
            accumulate(False)

        # Only the last valid block pays for the iota/cmp/select mask.
        @pl.when(block_idx == last_block)
        def _():
            accumulate(True)
        # Overhanging step (block_idx == num_blocks, if any) falls through
        # with no accumulation.


def content_loss(x, target, *, block_bytes_per_buffer=DEFAULT_BLOCK_BYTES):
    """Returns (x, loss): x passed through unchanged, loss == mse(x, target)."""
    assert x.shape == target.shape, "ContentLoss requires matching shapes"
    total = x.size
    if total == 0:
        return x, jnp.float32(0.0)

    sub_mult = _sublane_multiple(x.dtype, target.dtype)
    rows = total // LANES

    if (total % LANES) != 0 or rows < sub_mult:
        # Ragged / tiny fallback: one fused XLA elementwise+reduce reads each
        # input exactly once (HBM roofline) and avoids materializing
        # prefix-slice or padded HBM copies just to build a (rows, 128) view.
        loss = jnp.mean(
            (x.astype(jnp.float32) - target.astype(jnp.float32)) ** 2)
        return x, loss

    # Free, layout-preserving reshapes (contiguous, row-major).
    xf = x.reshape(rows, LANES)
    tf = target.reshape(rows, LANES)

    # Byte-budgeted block rows: keep per-step DMA large across dtypes, cap the
    # f32 working set, and never exceed the sublane-aligned row count.
    itemsize = max(jnp.dtype(x.dtype).itemsize, jnp.dtype(target.dtype).itemsize)
    budget_rows = max(
        sub_mult,
        _round_down(block_bytes_per_buffer // (LANES * itemsize), sub_mult))
    aligned_rows_cap = _round_down(rows, sub_mult)
    block_rows = min(budget_rows, MAX_BLOCK_ROWS, aligned_rows_cap)

    num_blocks = (rows + block_rows - 1) // block_rows
    # Unconditional 2-TensorCore split whenever there is more than one block
    # (only v7x has 2 TCs; sequential and harmless elsewhere).
    num_cores = 2 if num_blocks >= 2 else 1
    steps_per_core = (num_blocks + num_cores - 1) // num_cores
    has_overhang = num_cores * steps_per_core > num_blocks

    if has_overhang:
        # Clamp the single overhanging step; the kernel skips its compute.
        def in_index(c, i):
            return (jnp.minimum(c * steps_per_core + i, num_blocks - 1), 0)
    else:
        def in_index(c, i):
            return (c * steps_per_core + i, 0)

    kernel = functools.partial(
        _mse_partial_kernel,
        block_rows=block_rows,
        steps_per_core=steps_per_core,
        num_blocks=num_blocks,
        num_cores=num_cores,
        valid_rows=rows,
    )

    partials = pl.pallas_call(
        kernel,
        out_shape=jax.ShapeDtypeStruct((num_cores * SUBLANES, LANES),
                                       jnp.float32),
        grid_spec=pltpu.PrefetchScalarGridSpec(
            num_scalar_prefetch=0,
            grid=(num_cores, steps_per_core),
            in_specs=[
                pl.BlockSpec((block_rows, LANES), in_index),
                pl.BlockSpec((block_rows, LANES), in_index),
            ],
            out_specs=pl.BlockSpec((SUBLANES, LANES), lambda c, i: (c, 0)),
        ),
        compiler_params=pltpu.CompilerParams(
            dimension_semantics=("parallel", "arbitrary"),
            vmem_limit_bytes=VMEM_LIMIT_BYTES,
        ),
    )(xf, tf)

    # Final tiny (<= 16x128) cross-lane reduce + mean divide; fuses into one
    # small follow-on XLA op.
    loss = jnp.sum(partials) / jnp.float32(total)
    return x, loss


if __name__ == "__main__":
    key = jax.random.PRNGKey(0)
    kx, kt = jax.random.split(key)

    # 1) NCHW feature map, consistent with what ContentLoss sees in NST.
    x = jax.random.normal(kx, (2, 4, 16, 16), dtype=jnp.float32)
    target = jax.random.normal(kt, (2, 4, 16, 16), dtype=jnp.float32)
    out, loss = content_loss(x, target)
    out = jax.block_until_ready(out)
    loss = jax.block_until_ready(loss)
    ref_loss = jnp.mean((x - target) ** 2)
    assert jnp.allclose(loss, ref_loss, rtol=1e-6, atol=1e-6), (loss, ref_loss)
    assert jnp.array_equal(out, x), "forward must return x unchanged"

    # 2) Larger map, small block budget: multiple blocks, even 2-core split,
    #    masked partial last block.
    kx2, kt2 = jax.random.split(jax.random.PRNGKey(1))
    x_big = jax.random.normal(kx2, (1, 8, 190, 192), dtype=jnp.float32)
    t_big = jax.random.normal(kt2, (1, 8, 190, 192), dtype=jnp.float32)
    _, loss_big = content_loss(x_big, t_big, block_bytes_per_buffer=64 * 1024)
    loss_big = jax.block_until_ready(loss_big)
    ref_big = jnp.mean((x_big - t_big) ** 2)
    assert jnp.allclose(loss_big, ref_big, rtol=1e-5, atol=1e-6), (loss_big, ref_big)

    # 3) Odd block count: exercises the clamped/skipped overhang step of the
    #    unconditional 2-core split, plus the masked last block.
    kx3, kt3 = jax.random.split(jax.random.PRNGKey(2))
    x_odd = jax.random.normal(kx3, (1100, 128), dtype=jnp.float32)
    t_odd = jax.random.normal(kt3, (1100, 128), dtype=jnp.float32)
    _, loss_odd = content_loss(x_odd, t_odd, block_bytes_per_buffer=64 * 1024)
    loss_odd = jax.block_until_ready(loss_odd)
    ref_odd = jnp.mean((x_odd - t_odd) ** 2)
    assert jnp.allclose(loss_odd, ref_odd, rtol=1e-5, atol=1e-6), (loss_odd, ref_odd)

    # 4) bf16 inputs (in-kernel upcast path, 16-row sublane alignment).
    kx4, kt4 = jax.random.split(jax.random.PRNGKey(3))
    x_bf = jax.random.normal(kx4, (4, 8, 16, 16), dtype=jnp.bfloat16)
    t_bf = jax.random.normal(kt4, (4, 8, 16, 16), dtype=jnp.bfloat16)
    _, loss_bf = content_loss(x_bf, t_bf)
    loss_bf = jax.block_until_ready(loss_bf)
    ref_bf = jnp.mean((x_bf.astype(jnp.float32) - t_bf.astype(jnp.float32)) ** 2)
    assert jnp.allclose(loss_bf, ref_bf, rtol=1e-4, atol=1e-6), (loss_bf, ref_bf)

    # 5) Ragged size (not a multiple of 128): fused-XLA fallback path.
    kx5, kt5 = jax.random.split(jax.random.PRNGKey(4))
    x_rag = jax.random.normal(kx5, (3, 5, 7), dtype=jnp.float32)
    t_rag = jax.random.normal(kt5, (3, 5, 7), dtype=jnp.float32)
    out_rag, loss_rag = content_loss(x_rag, t_rag)
    loss_rag = jax.block_until_ready(loss_rag)
    ref_rag = jnp.mean((x_rag - t_rag) ** 2)
    assert jnp.allclose(loss_rag, ref_rag, rtol=1e-6, atol=1e-6), (loss_rag, ref_rag)
    assert jnp.array_equal(out_rag, x_rag)

    print("KERNEL_OK")
</pallas_src>

<mosaic_0001>
module attributes {stable_mosaic.version = 11 : i64} {
  func.func @_mse_partial_kernel(%arg0: i32, %arg1: i32, %arg2: memref<16x128xf32, #tpu.memory_space<vmem>>, %arg3: memref<16x128xf32, #tpu.memory_space<vmem>>, %arg4: memref<8x128xf32, #tpu.memory_space<vmem>>) attributes {dimension_semantics = [#tpu.dimension_semantics<parallel>, #tpu.dimension_semantics<arbitrary>], iteration_bounds = array<i64: 1, 1>, scalar_prefetch = 0 : i64, scratch_operands = 0 : i64, tpu.core_type = #tpu.core_type<tc>, window_params = [{transform_indices = @transform_0, window_bounds = array<i64: 16, 128>}, {transform_indices = @transform_1, window_bounds = array<i64: 16, 128>}, {transform_indices = @transform_2, window_bounds = array<i64: 8, 128>}]} {
    %c0_i32 = arith.constant 0 : i32
    %0 = arith.cmpi eq, %arg1, %c0_i32 : i32
    %1 = arith.extui %0 : i1 to i32
    %c0_i32_0 = arith.constant 0 : i32
    %2 = arith.cmpi ne, %1, %c0_i32_0 : i32
    scf.if %2 {
      %cst_8 = arith.constant 0.000000e+00 : f32
      %12 = vector.broadcast %cst_8 : f32 to vector<8x128xf32>
      %c0_9 = arith.constant 0 : index
      %c0_10 = arith.constant 0 : index
      %13 = vector.load %arg4[%c0_9, %c0_10] : memref<8x128xf32, #tpu.memory_space<vmem>>, vector<8x128xf32>
      tpu.vector_store %arg4[%c0_9, %c0_10], %12 {strides = array<i32>} : memref<8x128xf32, #tpu.memory_space<vmem>>, vector<8x128xf32>,
    } else {
    }
    %c0 = arith.constant 0 : index
    %c0_1 = arith.constant 0 : index
    %3 = vector.load %arg2[%c0, %c0_1] : memref<16x128xf32, #tpu.memory_space<vmem>>, vector<16x128xf32>
    %c0_2 = arith.constant 0 : index
    %c0_3 = arith.constant 0 : index
    %4 = vector.load %arg3[%c0_2, %c0_3] : memref<16x128xf32, #tpu.memory_space<vmem>>, vector<16x128xf32>
    %5 = arith.subf %3, %4 : vector<16x128xf32>
    %6 = arith.mulf %5, %5 : vector<16x128xf32>
    %c0_4 = arith.constant 0 : index
    %c0_5 = arith.constant 0 : index
    %7 = vector.load %arg4[%c0_4, %c0_5] : memref<8x128xf32, #tpu.memory_space<vmem>>, vector<8x128xf32>
    %8 = vector.shape_cast %6 : vector<16x128xf32> to vector<2x8x128xf32>
    %cst = arith.constant dense<0.000000e+00> : vector<8x128xf32>
    %9 = vector.multi_reduction <add>, %8, %cst [0] : vector<2x8x128xf32> to vector<8x128xf32>
    %10 = arith.addf %7, %9 : vector<8x128xf32>
    %c0_6 = arith.constant 0 : index
    %c0_7 = arith.constant 0 : index
    %11 = vector.load %arg4[%c0_6, %c0_7] : memref<8x128xf32, #tpu.memory_space<vmem>>, vector<8x128xf32>
    tpu.vector_store %arg4[%c0_6, %c0_7], %10 {strides = array<i32>} : memref<8x128xf32, #tpu.memory_space<vmem>>, vector<8x128xf32>,
    return
  }
  func.func @transform_0(%arg0: i32, %arg1: i32) -> (i32, i32) {
    %c1_i32 = arith.constant 1 : i32
    %0 = arith.muli %arg0, %c1_i32 : i32
    %1 = arith.addi %0, %arg1 : i32
    %c0_i32 = arith.constant 0 : i32
    %c0_i32_0 = arith.constant 0 : i32
    return %1, %c0_i32 : i32, i32
  }
  func.func @transform_1(%arg0: i32, %arg1: i32) -> (i32, i32) {
    %c1_i32 = arith.constant 1 : i32
    %0 = arith.muli %arg0, %c1_i32 : i32
    %1 = arith.addi %0, %arg1 : i32
    %c0_i32 = arith.constant 0 : i32
    %c0_i32_0 = arith.constant 0 : i32
    return %1, %c0_i32 : i32, i32
  }
  func.func @transform_2(%arg0: i32, %arg1: i32) -> (i32, i32) {
    %c0_i32 = arith.constant 0 : i32
    %c0_i32_0 = arith.constant 0 : i32
    return %arg0, %c0_i32 : i32, i32
  }
}

</mosaic_0001>

<bundles_post_ra>
// kernel: tpu_custom_call.1
= control target key start
LH: loop header
LB: loop body
LE: loop exit
PB: predicated region body
PF: predicated region fallthrough
CT: control target
= control target key end

     0   :  { %7 = vsyncpa [#allocation3], 0  ;;  %s219_s0 = inlined_call_operand.hbm [shape: f32[16,128], index: 0, kind: input, shape index: {}]   ;;  %s220_s1 = inlined_call_operand.hbm [shape: f32[16,128], index: 1, kind: input, shape index: {}]   ;;  %s221_s2 = inlined_call_operand.hbm [shape: f32[8,128], index: 2, kind: output, shape index: {}]  }
   0x1   :  { %8 = vsyncpa [#allocation6], 0 }
   0x2   :  { %9 = vsyncpa [#allocation4], 0  ;;  %s163_s9 = smov [#allocation2]   ;;  %s91_s13 = scalar_lea.hbm %s219_s0, 256 }
   0x3   :  { %s19_s10 = sshll.u32 %s163_s9, 4  ;;  %p92_p0 = scmp.ne.s32.totalorder %s219_s0, %s91_s13  ;;  %s20_s10 = int_to_ptr.vmem [resolvable:$true] %s19_s10 }
   0x4   :  { %p95_p1 = scmp.lt.u32.totalorder %s91_s13, %s219_s0 }
   0x6   :  { %p97_p2 = pnand %p95_p1, %p92_p0 }
   0x8   :  { %100 = shalt.err (!%p97_p2)
}
   0x9   :  { %s101_s18 = scalar_lea.vmem %s20_s10, 256  ;;  %p106_p4 = scmp.lt.s32.totalorder %s20_s10, %s20_s10 }
   0xa   :  { %p102_p3 = scmp.ne.s32.totalorder %s20_s10, %s101_s18  ;;  %p107_p5 = scmp.lt.s32.totalorder %s101_s18, %s101_s18 }
   0xc   :  { %p108_p6 = por %p107_p5, %p106_p4 }
   0xe   :  { %p109_p7 = pnand %p108_p6, %p102_p3 }
  0x10   :  { %112 = shalt.err (!%p109_p7)
}
  0x11   :  { %s164_s19 = smov 128   ;;  %s165_s20 = smov 8  }
  0x12   :  { %25 = dma.hbm_to_vmem [thread:$0]  %s219_s0, 256, %s20_s10, [#allocation3], %s164_s19, %s164_s19, %s165_s20  }
  0x13   :  { %s166_s23 = smov [#allocation5]   ;;  %s113_s27 = scalar_lea.hbm %s220_s1, 256 }
  0x14   :  { %s35_s24 = sshll.u32 %s166_s23, 4  ;;  %p114_p8 = scmp.ne.s32.totalorder %s220_s1, %s113_s27  ;;  %s36_s24 = int_to_ptr.vmem [resolvable:$true] %s35_s24 }
  0x15   :  { %p117_p9 = scmp.lt.u32.totalorder %s113_s27, %s220_s1 }
  0x17   :  { %p119_p10 = pnand %p117_p9, %p114_p8 }
  0x19   :  { %122 = shalt.err (!%p119_p10)
}
  0x1a   :  { %s123_s4 = scalar_lea.vmem %s36_s24, 256  ;;  %p128_p12 = scmp.lt.s32.totalorder %s36_s24, %s36_s24 }
  0x1b   :  { %p124_p11 = scmp.ne.s32.totalorder %s36_s24, %s123_s4  ;;  %p129_p13 = scmp.lt.s32.totalorder %s123_s4, %s123_s4 }
  0x1d   :  { %p130_p0 = por %p129_p13, %p128_p12 }
  0x1f   :  { %p131_p1 = pnand %p130_p0, %p124_p11 }
  0x21   :  { %134 = shalt.err (!%p131_p1)
}
  0x22   :  { %41 = dma.hbm_to_vmem [thread:$0]  %s220_s1, 256, %s36_s24, [#allocation6], %s164_s19, %s164_s19, %s165_s20  }
  0x23   :  { %157 = dma.done.wait [#allocation3], 256  }
  0x24   :  { %158 = vsyncadd [#allocation3], 4294967040 }
  0x25   :  { %159 = dma.done.wait [#allocation6], 256  }
  0x26   :  { %160 = vsyncadd [#allocation6], 4294967040  ;;  %v57_v0 = vld [vmem:[#allocation2] sm:$0xff]  ;;  %v58_v1 = vld [vmem:[#allocation2 + $0x8] sm:$0xff]  ;;  %s167_s6 = smov [#allocation7]  }
  0x27   :  { %v59_v2 = vld [vmem:[#allocation5] sm:$0xff]  ;;  %v60_v3 = vld [vmem:[#allocation5 + $0x8] sm:$0xff]  ;;  %s75_s7 = sshll.u32 %s167_s6, 4  ;;  %s76_s7 = int_to_ptr.vmem [resolvable:$true] %s75_s7 }
  0x28   :  { %v61_v4 = vsub.f32 %v57_v0, %v59_v2  ;;  %v62_v5 = vsub.f32 %v58_v1, %v60_v3  ;;  %s135_s8 = scalar_lea.vmem %s76_s7, 128  ;;  %p140_p3 = scmp.lt.s32.totalorder %s76_s7, %s76_s7 }
  0x29   :  { %p136_p2 = scmp.ne.s32.totalorder %s76_s7, %s135_s8  ;;  %p141_p4 = scmp.lt.s32.totalorder %s135_s8, %s135_s8 }
  0x2a   :  { %v63_v6 = vmul.f32 %v61_v4, %v61_v4  ;;  %v64_v7 = vmul.f32 %v62_v5, %v62_v5 }
  0x2b   :  { %p142_p5 = por %p141_p4, %p140_p3 }
  0x2c   :  { %v66_v8 = vadd.f32 %v64_v7, %v63_v6 }
  0x2d   :  { %p143_p6 = pnand %p142_p5, %p136_p2 }
  0x2e   :  { %68 = vst [vmem:[#allocation7] sm:$0xff] %v66_v8 }
  0x2f   :  { %146 = shalt.err (!%p143_p6)
}
  0x30   :  { %s147_s10 = scalar_lea.hbm %s221_s2, 128 }
  0x31   :  { %p148_p7 = scmp.ne.s32.totalorder %s221_s2, %s147_s10  ;;  %p151_p8 = scmp.lt.u32.totalorder %s147_s10, %s221_s2 }
  0x33   :  { %p153_p9 = pnand %p151_p8, %p148_p7 }
  0x35   :  { %156 = shalt.err (!%p153_p9)
}
  0x36   :  { %78 = dma.vmem_to_hbm [thread:$0]  %s76_s7, 128, %s221_s2, [#allocation4]  }
  0x37   :  { %161 = dma.done.wait [#allocation4], 128  }
  0x38   :  { %162 = vsyncadd [#allocation4], 4294967168 }
  0x39   :  { %82 = vsyncpa [#allocation3], 1 }
  0x3a   :  { %83 = vsyncpa [#allocation6], 1 }
  0x3b   :  { %84 = vsyncpa [#allocation4], 1 }

</bundles_post_ra>
